<compile_context>
chip_gen: v5e
topology: v5e:2x2
jax: 0.10.0
libtpu: 0.0.40
codegen_flags: <defaults>
</compile_context>

<pallas_src>
import numpy as np
import jax
import jax.numpy as jnp
from jax.experimental import pallas as pl
from jax.experimental.pallas import tpu as pltpu


# --------------------------------------------------------------------------------------
# Geometry helpers (setup-time glue, plain numpy f64 — builds the fixed operators)
# --------------------------------------------------------------------------------------
def _rotation_matrix(rad, ax):
    ax = np.asarray(ax, dtype=np.float64)
    ax = ax / np.sqrt((ax ** 2).sum())
    c, s = np.cos(rad), np.sin(rad)
    R = np.diag([c] * 3) + np.outer(ax, ax) * (1.0 - c)
    axs = ax * s
    R = R + np.array([[0.0, -axs[2], axs[1]],
                      [axs[2], 0.0, -axs[0]],
                      [-axs[1], axs[0], 0.0]])
    return R


def _perspective_xyz(h_fov, v_fov, u, v, in_rot, out_hw):
    """py360convert-style xyzpers (row-vector convention)."""
    out = np.ones((out_hw[0], out_hw[1], 3), np.float64)
    x_max = np.tan(h_fov / 2)
    y_max = np.tan(v_fov / 2)
    x_rng = np.linspace(-x_max, x_max, num=out_hw[1])
    y_rng = np.linspace(-y_max, y_max, num=out_hw[0])
    X, Y = np.meshgrid(x_rng, -y_rng)
    out[..., 0] = X
    out[..., 1] = Y
    Rx = _rotation_matrix(v, [1.0, 0.0, 0.0])
    Ry = _rotation_matrix(u, [0.0, 1.0, 0.0])
    Ri = _rotation_matrix(in_rot, np.array([0.0, 0.0, 1.0]).dot(Rx).dot(Ry))
    xyz = out @ Rx @ Ry @ Ri
    return xyz, Rx, Ry


def _bilinear_matrix(coor_x, coor_y, in_h, in_w):
    """Dense [P, in_h*in_w] matrix reproducing grid_sample(align_corners=True,
    padding_mode='border', mode='bilinear') at continuous pixel coords."""
    x = np.clip(coor_x.astype(np.float64), 0.0, in_w - 1.0)
    y = np.clip(coor_y.astype(np.float64), 0.0, in_h - 1.0)
    x0 = np.floor(x).astype(np.int64)
    y0 = np.floor(y).astype(np.int64)
    x1 = np.minimum(x0 + 1, in_w - 1)
    y1 = np.minimum(y0 + 1, in_h - 1)
    wx = x - x0
    wy = y - y0
    P = x.shape[0]
    Wm = np.zeros((P, in_h * in_w), np.float64)
    rows = np.arange(P)
    np.add.at(Wm, (rows, y0 * in_w + x0), (1 - wx) * (1 - wy))
    np.add.at(Wm, (rows, y0 * in_w + x1), wx * (1 - wy))
    np.add.at(Wm, (rows, y1 * in_w + x0), (1 - wx) * wy)
    np.add.at(Wm, (rows, y1 * in_w + x1), wx * wy)
    return Wm


def build_operators(skybox_size, pano_hw):
    """Returns (W_e2p [6*s*s, H*W], ray_norm [6*s*s], W_c2e [H*W, 6*s*s]), float64."""
    s = skybox_size
    H, W = pano_hw
    HW = H * W
    ss = s * s
    u_degs = [0, 90, -180, -90, 0, 0]
    v_degs = [0, 0, 0, 0, 90, -90]
    h_fov = v_fov = np.deg2rad(90.0)

    # ---- E2P: per-face bilinear sampling matrices from the ERP image --------------
    W_e2p = np.zeros((6 * ss, HW), np.float64)
    Rxs, Rys = [], []
    for i in range(6):
        u = -np.deg2rad(float(u_degs[i]))
        v = np.deg2rad(float(v_degs[i]))
        xyz, Rx, Ry = _perspective_xyz(h_fov, v_fov, u, v, 0.0, (s, s))
        Rxs.append(Rx)
        Rys.append(Ry)
        x, y, z = xyz[..., 0], xyz[..., 1], xyz[..., 2]
        uu = np.arctan2(x, z)
        vv = np.arctan2(y, np.sqrt(x ** 2 + z ** 2))
        coor_x = (uu / (2 * np.pi) + 0.5) * W - 0.5
        coor_y = (-vv / np.pi + 0.5) * H - 0.5
        W_e2p[i * ss:(i + 1) * ss] = _bilinear_matrix(
            coor_x.reshape(-1), coor_y.reshape(-1), H, W)

    # ---- depth -> distance scale: || inv_K[:3,:3] @ [col, row, 1] || --------------
    f = s / 2.0  # K[0,0]=K[0,2]=K[1,1]=K[1,2]=s/2
    cc, rr = np.meshgrid(np.arange(s), np.arange(s))
    ray = np.sqrt((cc / f - 1.0) ** 2 + (rr / f - 1.0) ** 2 + 1.0)   # [s, s]
    ray_norm = np.tile(ray.reshape(-1), 6)                            # [6*s*s]

    # ---- C2E: ERP pixel -> (face, bilinear weights on that face) ------------------
    ex = np.arange(W)
    ey = np.arange(H)
    lon = ((ex + 0.5) / W - 0.5) * 2 * np.pi
    lat = (0.5 - (ey + 0.5) / H) * np.pi
    LON, LAT = np.meshgrid(lon, lat)
    d = np.stack([np.cos(LAT) * np.sin(LON),
                  np.sin(LAT),
                  np.cos(LAT) * np.cos(LON)], axis=-1).reshape(-1, 3)  # [HW, 3]

    bx = np.zeros((HW, 6)); by = np.zeros((HW, 6)); bz = np.zeros((HW, 6))
    for i in range(6):
        b = d @ Rys[i].T @ Rxs[i].T
        bx[:, i], by[:, i], bz[:, i] = b[:, 0], b[:, 1], b[:, 2]
    face = np.argmax(bz, axis=1)
    rows = np.arange(HW)
    fbx, fby, fbz = bx[rows, face], by[rows, face], bz[rows, face]
    px = np.clip(fbx / fbz, -1.0, 1.0)
    py = np.clip(fby / fbz, -1.0, 1.0)
    col = (px + 1.0) / 2.0 * (s - 1)
    row = (1.0 - py) / 2.0 * (s - 1)
    Wface = _bilinear_matrix(col, row, s, s)            # [HW, s*s]
    W_c2e = np.zeros((HW, 6 * ss), np.float64)
    for i in range(6):
        m = face == i
        W_c2e[m, i * ss:(i + 1) * ss] = Wface[m]

    return W_e2p, ray_norm, W_c2e


def _round_up(x, m):
    return ((x + m - 1) // m) * m


def build_fused_operator(skybox_size, pano_hw, *, tn=256, tk=256):
    """Fuses E2P -> depth2dist-scale -> C2E into one bf16 matrix C_t [K_pad, N_pad],
    laid out so the kernel computes out = x_row @ C_t (lane-dense, 128-padded)."""
    H, W = pano_hw
    HW = H * W
    W_e2p, ray, W_c2e = build_operators(skybox_size, pano_hw)
    # erp_dist_flat = W_c2e @ diag(ray) @ W_e2p @ erp_depth_flat
    C_full = W_c2e @ (ray[:, None] * W_e2p)             # [HW_out, HW_in], f64
    K_pad = _round_up(HW, max(tk, 128))
    N_pad = _round_up(HW, max(tn, 128))
    C_t = np.zeros((K_pad, N_pad), np.float32)
    C_t[:HW, :HW] = C_full.T.astype(np.float32)
    # bf16 weights: bandwidth-bound path; f32 MXU accumulation keeps numerics.
    return jnp.asarray(C_t, dtype=jnp.bfloat16), C_full


# --------------------------------------------------------------------------------------
# Pallas kernel: tiled [8, K] @ [K, N] matmul with f32 VMEM accumulation
# --------------------------------------------------------------------------------------
def _erp_depth2dist_kernel(x_ref, c_ref, o_ref, acc_ref):
    # x: [8, tk] bf16   (row 0 = ERP depth chunk, rows 1..7 zero padding)
    # c: [tk, tn] bf16  (fused E2P * ray * C2E operator, transposed)
    # o: [8, tn] f32    (row 0 = ERP distance chunk)
    k = pl.program_id(1)

    @pl.when(k == 0)
    def _():
        acc_ref[...] = jnp.zeros_like(acc_ref)

    acc_ref[...] += jnp.dot(x_ref[...], c_ref[...],
                            preferred_element_type=jnp.float32)

    @pl.when(k == pl.num_programs(1) - 1)
    def _():
        o_ref[...] = acc_ref[...].astype(o_ref.dtype)


def erp_depth2dist(erp_depth, C_t, pano_hw, *, tn=256, tk=256):
    """erp_depth: [1,1,H,W] (or [H,W]) f32; C_t: [K_pad, N_pad] bf16 fused operator.
    Returns the ERP radial distance map [H, W] f32."""
    H, W = pano_hw
    HW = H * W
    K_pad, N_pad = C_t.shape
    assert K_pad % tk == 0 and N_pad % tn == 0 and tk % 128 == 0 and tn % 128 == 0

    # Single depth map -> M padded to 8 sublanes.
    # TODO(synk): if several depth maps are processed together, batch them into M
    # (pad to 128/256) to amortize the weight stream over a full MXU tile.
    x_flat = erp_depth.reshape(-1)[:HW].astype(jnp.bfloat16)
    x_pad = jnp.zeros((8, K_pad), jnp.bfloat16).at[0, :HW].set(x_flat)

    grid = (N_pad // tn, K_pad // tk)   # reduction (K) axis last
    cost = pl.CostEstimate(
        flops=2 * 8 * K_pad * N_pad,
        transcendentals=0,
        bytes_accessed=K_pad * N_pad * 2 + 8 * K_pad * 2 + 8 * N_pad * 4,
    )

    out = pl.pallas_call(
        _erp_depth2dist_kernel,
        out_shape=jax.ShapeDtypeStruct((8, N_pad), jnp.float32),
        grid_spec=pltpu.PrefetchScalarGridSpec(
            num_scalar_prefetch=0,
            grid=grid,
            in_specs=[
                pl.BlockSpec((8, tk), lambda n, k: (0, k)),
                pl.BlockSpec((tk, tn), lambda n, k: (k, n)),
            ],
            out_specs=pl.BlockSpec((8, tn), lambda n, k: (0, n)),
            scratch_shapes=[pltpu.VMEM((8, tn), jnp.float32)],
        ),
        compiler_params=pltpu.CompilerParams(
            # N axis parallel -> v7x megacore splits it across its 2 TCs;
            # harmless on v5e/v6e (1 TC).  K is the reduction -> "arbitrary".
            dimension_semantics=("parallel", "arbitrary"),
            # Double-buffered bf16 [tk,tn] tiles + x/acc/out fit comfortably;
            # 32 MiB scoped limit is safe on every generation incl. v7x (64 MiB).
            vmem_limit_bytes=32 * 1024 * 1024,
        ),
        cost_estimate=cost,
    )(x_pad, C_t)
    return out[0, :HW].reshape(H, W)


# --------------------------------------------------------------------------------------
if __name__ == "__main__":
    skybox_size = 8
    pano_hw = (16, 32)
    H, W = pano_hw
    HW = H * W
    tn = tk = 256   # -> grid (2, 2) at this demo size; exercises the accumulation path

    # Deterministic "parameters": the fused, fixed, bf16 sampling operator.
    C_t, C_full_np = build_fused_operator(skybox_size, pano_hw, tn=tn, tk=tk)

    key = jax.random.PRNGKey(0)
    erp_depth = jax.random.uniform(key, (1, 1, H, W), jnp.float32, 1.0, 5.0)

    run = jax.jit(lambda x: erp_depth2dist(x, C_t, pano_hw, tn=tn, tk=tk))
    out = jax.block_until_ready(run(erp_depth))

    # Full-precision reference of the linearized pipeline (E2P -> ray scale -> C2E).
    x_np = np.asarray(erp_depth, dtype=np.float64).reshape(-1)
    ref = (C_full_np @ x_np).reshape(pano_hw)

    assert out.shape == pano_hw and out.dtype == jnp.float32
    # bf16 weights + bf16 activations with f32 accumulation: ~1% relative error budget.
    assert np.allclose(np.asarray(out, dtype=np.float64), ref, rtol=3e-2, atol=3e-2)

    print("KERNEL_OK")
</pallas_src>

<mosaic_0001>
module attributes {stable_mosaic.version = 11 : i64} {
  func.func @_erp_depth2dist_kernel(%arg0: i32, %arg1: i32, %arg2: memref<8x256xbf16, #tpu.memory_space<vmem>>, %arg3: memref<256x256xbf16, #tpu.memory_space<vmem>>, %arg4: memref<8x256xf32, #tpu.memory_space<vmem>>, %arg5: memref<8x256xf32, #tpu.memory_space<vmem>>) attributes {dimension_semantics = [#tpu.dimension_semantics<parallel>, #tpu.dimension_semantics<arbitrary>], iteration_bounds = array<i64: 2, 2>, scalar_prefetch = 0 : i64, scratch_operands = 1 : i64, tpu.core_type = #tpu.core_type<tc>, window_params = [{transform_indices = @transform_0, window_bounds = array<i64: 8, 256>}, {transform_indices = @transform_1, window_bounds = array<i64: 256, 256>}, {transform_indices = @transform_2, window_bounds = array<i64: 8, 256>}]} {
    %c0_i32 = arith.constant 0 : i32
    %0 = arith.cmpi eq, %arg1, %c0_i32 : i32
    %1 = arith.extui %0 : i1 to i32
    %c0_i32_0 = arith.constant 0 : i32
    %2 = arith.cmpi ne, %1, %c0_i32_0 : i32
    scf.if %2 {
      %cst_9 = arith.constant 0.000000e+00 : f32
      %12 = vector.broadcast %cst_9 : f32 to vector<8x256xf32>
      %c0_10 = arith.constant 0 : index
      %c0_11 = arith.constant 0 : index
      %13 = vector.load %arg5[%c0_10, %c0_11] : memref<8x256xf32, #tpu.memory_space<vmem>>, vector<8x256xf32>
      tpu.vector_store %arg5[%c0_10, %c0_11], %12 {strides = array<i32>} : memref<8x256xf32, #tpu.memory_space<vmem>>, vector<8x256xf32>,
    } else {
    }
    %c0 = arith.constant 0 : index
    %c0_1 = arith.constant 0 : index
    %3 = vector.load %arg5[%c0, %c0_1] : memref<8x256xf32, #tpu.memory_space<vmem>>, vector<8x256xf32>
    %c0_2 = arith.constant 0 : index
    %c0_3 = arith.constant 0 : index
    %4 = vector.load %arg2[%c0_2, %c0_3] : memref<8x256xbf16, #tpu.memory_space<vmem>>, vector<8x256xbf16>
    %c0_4 = arith.constant 0 : index
    %c0_5 = arith.constant 0 : index
    %5 = vector.load %arg3[%c0_4, %c0_5] : memref<256x256xbf16, #tpu.memory_space<vmem>>, vector<256x256xbf16>
    %cst = arith.constant dense<0.000000e+00> : vector<8x256xf32>
    %6 = tpu.matmul %4, %5, %cst {dimension_numbers = #tpu.dot_dimension_numbers<[1], [0], [0], [1], [0, 0, 1, 1], [], []>} : vector<8x256xbf16>, vector<256x256xbf16>, vector<8x256xf32> -> vector<8x256xf32>
    %7 = arith.addf %3, %6 : vector<8x256xf32>
    %c0_6 = arith.constant 0 : index
    %c0_7 = arith.constant 0 : index
    %8 = vector.load %arg5[%c0_6, %c0_7] : memref<8x256xf32, #tpu.memory_space<vmem>>, vector<8x256xf32>
    tpu.vector_store %arg5[%c0_6, %c0_7], %7 {strides = array<i32>} : memref<8x256xf32, #tpu.memory_space<vmem>>, vector<8x256xf32>,
    %c1_i32 = arith.constant 1 : i32
    %9 = arith.cmpi eq, %arg1, %c1_i32 : i32
    %10 = arith.extui %9 : i1 to i32
    %c0_i32_8 = arith.constant 0 : i32
    %11 = arith.cmpi ne, %10, %c0_i32_8 : i32
    scf.if %11 {
      %c0_9 = arith.constant 0 : index
      %c0_10 = arith.constant 0 : index
      %12 = vector.load %arg5[%c0_9, %c0_10] : memref<8x256xf32, #tpu.memory_space<vmem>>, vector<8x256xf32>
      %c0_11 = arith.constant 0 : index
      %c0_12 = arith.constant 0 : index
      %13 = vector.load %arg4[%c0_11, %c0_12] : memref<8x256xf32, #tpu.memory_space<vmem>>, vector<8x256xf32>
      tpu.vector_store %arg4[%c0_11, %c0_12], %12 {strides = array<i32>} : memref<8x256xf32, #tpu.memory_space<vmem>>, vector<8x256xf32>,
    } else {
    }
    return
  }
  func.func @transform_0(%arg0: i32, %arg1: i32) -> (i32, i32) {
    %c0_i32 = arith.constant 0 : i32
    %c0_i32_0 = arith.constant 0 : i32
    return %c0_i32, %arg1 : i32, i32
  }
  func.func @transform_1(%arg0: i32, %arg1: i32) -> (i32, i32) {
    %c0_i32 = arith.constant 0 : i32
    return %arg1, %arg0 : i32, i32
  }
  func.func @transform_2(%arg0: i32, %arg1: i32) -> (i32, i32) {
    %c0_i32 = arith.constant 0 : i32
    %c0_i32_0 = arith.constant 0 : i32
    return %c0_i32, %arg0 : i32, i32
  }
}

</mosaic_0001>

<bundles_post_ra>
// kernel: squeeze.1
= control target key start
LH: loop header
LB: loop body
LE: loop exit
PB: predicated region body
PF: predicated region fallthrough
CT: control target
= control target key end

     0   :  { %s90_s0 = inlined_call_operand.vmem [shape: f32[512], index: 0, kind: input, shape index: {}]   ;;  %s91_s1 = inlined_call_operand.hbm [shape: f32[16,32], index: 1, kind: output, shape index: {}]  }
   0x1   :  { %v5_v0 = vld [vmem:[%s90_s0] sm:$0xf] }
   0x2   :  { %6 = vst [vmem:[#allocation2] sm:$0xf] %v5_v0 }
   0x3   :  { %2 = vsyncpa [#allocation1], 0  ;;  %s70_s0 = smov 96   ;;  %s71_s8 = smov 32   ;;  %vm8_vm0 = vcmask 261120  }
   0x4   :  { %s72_s9 = smov 64   ;;  %s73_s10 = smov [#allocation0]  }
   0x5   :  { %s31_s11 = sshll.u32 %s73_s10, 4  ;;  %s33_s1 = sshll.u32 %s91_s1, 4  ;;  %s32_s11 = int_to_ptr.vmem [resolvable:$true] %s31_s11  ;;  %s34_s1 = int_to_ptr.hbm [resolvable:$true] %s33_s1 }
   0x9   :  { %v10_v1 = vld [vmem:[#allocation2] sm:$0xf]  }
   0xa   :  { %v22_v2 = vld [vmem:[#allocation2] sm:$0xf]   ;;  %11 = vrot.lane.b32.xlu0 %v10_v1, %s70_s0 }
   0xb   :  { %23 = vrot.lane.b32.xlu1 %v22_v2, %s71_s8  ;;  %v16_v3 = vld [vmem:[#allocation2] sm:$0xf]  }
   0xc   :  { %v7_v4 = vld [vmem:[#allocation2] sm:$0xf]  }
   0xd   :  { %9 = vst.msk [vmem:[#allocation0] ss:$4 sm:$0xf] %vm8_vm0, %v7_v4  }
  0x12   :  { %17 = vrot.lane.b32.xlu0 %v16_v3, %s72_s9 }
  0x7c   :  { %v12_v5 = vpop.permute.xlu0 %11  }
  0x7d   :  { %v24_v6 = vpop.permute.xlu1 %23   ;;  %15 = vst.msk [vmem:[#allocation0 + $0x1] ss:$4 sm:$0xf] %vm8_vm0, %v12_v5  }
  0x7e   :  { %27 = vst.msk [vmem:[#allocation0 + $0x3] ss:$4 sm:$0xf] %vm8_vm0, %v24_v6  }
  0x84   :  { %v18_v7 = vpop.permute.xlu0 %17  }
  0x85   :  { %21 = vst.msk [vmem:[#allocation0 + $0x2] ss:$4 sm:$0xf] %vm8_vm0, %v18_v7  }
  0x86   :  { %36 = dma.vmem_to_hbm [thread:$0]  %s32_s11, 256, %s34_s1, [#allocation1]  }
  0x87   :  { %68 = dma.done.wait [#allocation1], 256  }
  0x88   :  { %69 = vsyncadd [#allocation1], 4294967040 }
  0x89   :  { %39 = vsyncpa [#allocation1], 1 }

// kernel: _lambda_.1
= control target key start
LH: loop header
LB: loop body
LE: loop exit
PB: predicated region body
PF: predicated region fallthrough
CT: control target
= control target key end

     0   :  { %7 = vsyncpa [#allocation4], 0  ;;  %s1137_s0 = inlined_call_operand.vmem [shape: bf16[8,512], index: 0, kind: input, shape index: {}]   ;;  %s1138_s1 = inlined_call_operand.hbm [shape: bf16[512,512], index: 1, kind: input, shape index: {}]   ;;  %s1139_s2 = inlined_call_operand.vmem [shape: f32[8,512], index: 2, kind: output, shape index: {}]  }
   0x1   :  { %9 = vsyncpa [#allocation4 + $0x1], 0  ;;  %s946_s9 = smov 0   ;;  %s948_s10 = smov 0  }
   0x2   :  { %s950_s11 = smov 0   ;;  %s952_s12 = smov 0  }
   0x3   :  { %s954_s13 = smov 0   ;;  %s956_s14 = smov 0  }
   0x4   :  { %s958_s15 = smov 0   ;;  %s960_s16 = smov 0  }
   0x5 LB: > { %s574_s17 = sadd.s32 4294967295, %s925_s16   ;;  %s24_s18 = sadd.s32 1, %s917_s14  ;;  %s925_s16 = sphi %s960_s16, %s15_s16   ;;  %s921_s15 = sphi %s958_s15, %s1148_s15   ;;  %s917_s14 = sphi %s956_s14, %s1147_s14   ;;  %s913_s13 = sphi %s954_s13, %s1146_s13   ;;  %s909_s12 = sphi %s952_s12, %s1145_s12   ;;  %s905_s11 = sphi %s950_s11, %s1144_s11   ;;  %s901_s10 = sphi %s948_s10, %s1143_s10   ;;  %s897_s9 = sphi %s946_s9, %s1142_s9  }
   0x6   : > { %p25_p0 = scmp.ge.s32.totalorder %s24_s18, 2  ;;  %s27_s19 = sadd.s32 1, %s921_s15 }
   0x7   : > { %s62_s20 = sadd.s32 1, %s905_s11  ;;  %p69_p1 = scmp.ne.s32.totalorder %s905_s11, %s901_s10 }
   0x8   : > { %s1150_s18 = smov (%p25_p0, %s24_s18), 0  ;;  %s1152_s19 = smov (!%p25_p0, %s27_s19), %s921_s15 }
   0x9   : > { %s57_s21 = ssub.s32 %s917_s14, %s1150_s18  ;;  %p70_p2 = scmp.eq.s32.totalorder %s925_s16, 0 }
   0xa   : > { %p29_p3 = scmp.ge.s32.totalorder %s1152_s19, 2  ;;  %p75_p4 = scmp.ne.s32.totalorder %s901_s10, %s897_s9 }
   0xb   : > { %p997_p5 = por %p70_p2, %p69_p1  ;;  %p76_p6 = scmp.eq.s32.totalorder %s574_s17, 0 }
   0xc   : > { %s1154_s19 = smov (%p29_p3, %s1152_s19), 0  ;;  %p760_p8 = scmp.lt.s32.totalorder %s925_s16, 4 }
   0xd   : > { %p1003_p7 = por %p76_p6, %p75_p4  ;;  %s58_s24 = ssub.s32 %s921_s15, %s1154_s19 }
   0xe   : > { %s59_s25 = sor.u32 %s58_s24, %s57_s21  ;;  %s134_s26 = sand.u32 1, %s905_s11  }
   0xf   : > { %p60_p9 = scmp.eq.s32.totalorder %s59_s25, 0  ;;  %s578_s27 = sshll.u32 %s134_s26, 8 }
  0x10   : > { %s580_s28 = sshll.u32 %s921_s15, 1  ;;  %s721_s30 = sshll.u32 %s917_s14, 7 }
  0x11   : > { %s1013_s29 = scalar_select %p60_p9, %s905_s11, %s62_s20  }
  0x12   : > { %s144_s3 = sadd.s32 %s721_s30, %s580_s28  ;;  %s138_s4 = scalar_lea.vmem [#allocation3], %s578_s27 }
  0x13   : > { %s149_s5 = sshll.u32 %s138_s4, 4  ;;  %s582_s6 = sshll.u32 %s144_s3, 2  ;;  %s150_s5 = int_to_ptr.vmem [resolvable:$true] %s149_s5 }
  0x14   : > { %s146_s9 = scalar_lea.hbm %s1138_s1, %s582_s6  ;;  %p757_p10 = pnand %p760_p8, %p997_p5 }
  0x15   : > { %s147_s17 = sshll.u32 %s146_s9, 4  ;;  %s135_s21 = scalar_lea.sflag [#allocation4], %s134_s26  ;;  %s148_s17 = int_to_ptr.hbm [resolvable:$true] %s147_s17 }
  0x16   : > { %s927_s20 = smov 256   ;;  %s928_s24 = smov 128  }
  0x17   : > { %s929_s25 = smov 8   ;;  %p583_p11 = scmp.ge.s32.totalorder %s925_s16, 1 }
  0x18   : > { %759 = dma.hbm_to_vmem [thread:$0]  (!%p757_p10), %s148_s17, 4096, %s150_s5, %s135_s21, %s927_s20, %s928_s24, %s929_s25  }
  0x19   : > { %p157_p12 = scmp.lt.s32.totalorder %s925_s16, 5 }
  0x1b   : > { %p158_p13 = pnand %p583_p11, %p157_p12 }
  0x1c   : > { %s163_s27 = sand.u32 (!%p158_p13), 1, %s901_s10  }
  0x1d   : > { %161 = sbr.rel (%p158_p13) target bundleno = 230 (0xe6), region = 28  ;;  %s584_s28 = sshll.u32 (!%p158_p13), %s163_s27, 8 }
  0x1e   : > { %s164_s30 = scalar_lea.sflag (!%p158_p13), [#allocation4], %s163_s27  ;;  %s1026_s3 = scalar_lea.vmem (!%p158_p13), [#allocation3], %s584_s28 }
  0x22   : > { %892 = dma.done.wait (%p1003_p7), %s164_s30, 4096  }
  0x23   : > { %894 = vsyncadd (%p1003_p7), %s164_s30, 4294963200  ;;  %s585_s22 = sshll.u32 %s909_s12, 1  ;;  %s587_s26 = sshll.u32 %s913_s13, 1 }
  0x24   : > { %p195_p0 = scmp.lt.s32.totalorder %s585_s22, 3  ;;  %p203_p1 = scmp.lt.s32.totalorder %s587_s26, 3 }
  0x25   : > { %p589_p2 = scmp.ne.s32.totalorder %s909_s12, 0 }
  0x26   : > { %s1156_s22 = smov (!%p195_p0, %s585_s22), 3  ;;  %s1158_s26 = smov (!%p203_p1, %s587_s26), 3 }
  0x27   : > { %s586_s4 = sshll.u32 %s1156_s22, 2  ;;  %s588_s8 = sshll.u32 %s1158_s26, 3 }
  0x28   : > { %s1037_s7 = scalar_lea.vmem %s1137_s0, %s586_s4  ;;  %s1042_s23 = scalar_lea.vmem %s1139_s2, %s588_s8 }
  0x29   : > { %211 = sbr.rel (%p589_p2) target bundleno = 49 (0x31), region = 36 }
  0x2e   : > { %v930_v0 = vmov 0.0  }
  0x2f   : > { %212 = vst [vmem:[#allocation2] sm:$0xff] %v930_v0 }
  0x30   : > { %213 = vst [vmem:[#allocation2 + $0x8] sm:$0xff] %v930_v0 }
  0x31 PF: > { %v648_v1 = vld [vmem:[%s1026_s3 + $0x70] sm:$0xf]  ;;  %v737_v2 = vld [vmem:[%s1026_s3 + $0x74] sm:$0xf0]  ;;  %v736_v6 = vld [vmem:[%s1026_s3 + $0x74] sm:$0xf] }
  0x32   : > { %v712_v3 = vld [vmem:[%s1026_s3 + $0xf0] sm:$0xf]  ;;  %v649_v4 = vor.u32 %v737_v2, %v648_v1  ;;  %v753_v5 = vld [vmem:[%s1026_s3 + $0xf4] sm:$0xf0]  ;;  %v650_v7 = vld [vmem:[%s1026_s3 + $0x78] sm:$0xf0] }
  0x33   : > { %v713_v8 = vor.u32 %v753_v5, %v712_v3  ;;  %v653_v9 = vor.u32 %v736_v6, %v650_v7  ;;  %v752_v10 = vld [vmem:[%s1026_s3 + $0xf4] sm:$0xf]  ;;  %v714_v11 = vld [vmem:[%s1026_s3 + $0xf8] sm:$0xf0]  ;;  %v640_v12 = vld [vmem:[%s1026_s3 + $0x60] sm:$0xf] }
  0x34   : > { %416 = vmatpush.bf16.msra.mxu0 %v649_v4  ;;  %v717_v13 = vor.u32 %v752_v10, %v714_v11  ;;  %v735_v14 = vld [vmem:[%s1026_s3 + $0x64] sm:$0xf0]  ;;  %v704_v15 = vld [vmem:[%s1026_s3 + $0xe0] sm:$0xf]  ;;  %v734_v19 = vld [vmem:[%s1026_s3 + $0x64] sm:$0xf] }
  0x35   : > { %v751_v16 = vld [vmem:[%s1026_s3 + $0xe4] sm:$0xf0]  ;;  %429 = vmatpush.bf16.msra.mxu1 %v713_v8  ;;  %442 = vmatpush.bf16.msra.mxu2 %v653_v9  ;;  %v641_v17 = vor.u32 %v735_v14, %v640_v12  ;;  %v642_v20 = vld [vmem:[%s1026_s3 + $0x68] sm:$0xf0]  ;;  %v750_v21 = vld [vmem:[%s1026_s3 + $0xe4] sm:$0xf] }
  0x36   : > { %v705_v18 = vor.u32 %v751_v16, %v704_v15  ;;  %455 = vmatpush.bf16.msra.mxu3 %v717_v13  ;;  %v645_v22 = vor.u32 %v734_v19, %v642_v20  ;;  %v706_v23 = vld [vmem:[%s1026_s3 + $0xe8] sm:$0xf0]  ;;  %v632_v24 = vld [vmem:[%s1026_s3 + $0x50] sm:$0xf]  ;;  %v733_v25 = vld [vmem:[%s1026_s3 + $0x54] sm:$0xf0] }
  0x37   : > { %v709_v26 = vor.u32 %v750_v21, %v706_v23  ;;  %v696_v27 = vld [vmem:[%s1026_s3 + $0xd0] sm:$0xf]  ;;  %v749_v28 = vld [vmem:[%s1026_s3 + $0xd4] sm:$0xf0]  ;;  %v732_v29 = vld [vmem:[%s1026_s3 + $0x54] sm:$0xf]  ;;  %v633_v30 = vor.u32 %v733_v25, %v632_v24 }
  0x38   : > { %417 = vmatpush.bf16.msra.mxu0 %v641_v17  ;;  %v634_v31 = vld [vmem:[%s1026_s3 + $0x58] sm:$0xf0]  ;;  %v748_v32 = vld [vmem:[%s1026_s3 + $0xd4] sm:$0xf]  ;;  %v697_v34 = vor.u32 %v749_v28, %v696_v27  ;;  %v624_v36 = vld [vmem:[%s1026_s3 + $0x40] sm:$0xf] }
  0x39   : > { %v698_v33 = vld [vmem:[%s1026_s3 + $0xd8] sm:$0xf0]  ;;  %430 = vmatpush.bf16.msra.mxu1 %v705_v18  ;;  %443 = vmatpush.bf16.msra.mxu2 %v645_v22  ;;  %v637_v35 = vor.u32 %v732_v29, %v634_v31  ;;  %v731_v37 = vld [vmem:[%s1026_s3 + $0x44] sm:$0xf0]  ;;  %v688_v38 = vld [vmem:[%s1026_s3 + $0xc0] sm:$0xf] }
  0x3a   : > { %456 = vmatpush.bf16.msra.mxu3 %v709_v26  ;;  %v701_v39 = vor.u32 %v748_v32, %v698_v33  ;;  %v747_v40 = vld [vmem:[%s1026_s3 + $0xc4] sm:$0xf0]  ;;  %v730_v41 = vld [vmem:[%s1026_s3 + $0x44] sm:$0xf]  ;;  %v626_v42 = vld [vmem:[%s1026_s3 + $0x48] sm:$0xf0]  ;;  %v625_v45 = vor.u32 %v731_v37, %v624_v36 }
  0x3b   : > { %v746_v43 = vld [vmem:[%s1026_s3 + $0xc4] sm:$0xf]  ;;  %v690_v44 = vld [vmem:[%s1026_s3 + $0xc8] sm:$0xf0]  ;;  %v689_v46 = vor.u32 %v747_v40, %v688_v38  ;;  %v629_v47 = vor.u32 %v730_v41, %v626_v42  ;;  %v616_v48 = vld [vmem:[%s1026_s3 + $0x30] sm:$0xf] }
  0x3c   : > { %418 = vmatpush.bf16.msra.mxu0 %v633_v30  ;;  %v729_v49 = vld [vmem:[%s1026_s3 + $0x34] sm:$0xf0]  ;;  %v680_v50 = vld [vmem:[%s1026_s3 + $0xb0] sm:$0xf]  ;;  %v693_v51 = vor.u32 %v746_v43, %v690_v44  ;;  %v728_v53 = vld [vmem:[%s1026_s3 + $0x34] sm:$0xf] }
  0x3d   : > { %431 = vmatpush.bf16.msra.mxu1 %v697_v34  ;;  %444 = vmatpush.bf16.msra.mxu2 %v637_v35  ;;  %v745_v52 = vld [vmem:[%s1026_s3 + $0xb4] sm:$0xf0]  ;;  %v618_v54 = vld [vmem:[%s1026_s3 + $0x38] sm:$0xf0]  ;;  %v744_v55 = vld [vmem:[%s1026_s3 + $0xb4] sm:$0xf]  ;;  %v617_v57 = vor.u32 %v729_v49, %v616_v48 }
  0x3e   : > { %457 = vmatpush.bf16.msra.mxu3 %v701_v39  ;;  %v682_v56 = vld [vmem:[%s1026_s3 + $0xb8] sm:$0xf0]  ;;  %v681_v58 = vor.u32 %v745_v52, %v680_v50  ;;  %v621_v59 = vor.u32 %v728_v53, %v618_v54  ;;  %v608_v60 = vld [vmem:[%s1026_s3 + $0x20] sm:$0xf]  ;;  %v727_v61 = vld [vmem:[%s1026_s3 + $0x24] sm:$0xf0] }
  0x3f   : > { %v672_v62 = vld [vmem:[%s1026_s3 + $0xa0] sm:$0xf]  ;;  %v685_v63 = vor.u32 %v744_v55, %v682_v56  ;;  %v743_v0 = vld [vmem:[%s1026_s3 + $0xa4] sm:$0xf0]  ;;  %v726_v1 = vld [vmem:[%s1026_s3 + $0x24] sm:$0xf]  ;;  %v609_v5 = vor.u32 %v727_v61, %v608_v60 }
  0x40   : > { %419 = vmatpush.bf16.msra.mxu0 %v625_v45  ;;  %v610_v2 = vld [vmem:[%s1026_s3 + $0x28] sm:$0xf0]  ;;  %v742_v3 = vld [vmem:[%s1026_s3 + $0xa4] sm:$0xf]  ;;  %v673_v6 = vor.u32 %v743_v0, %v672_v62  ;;  %v600_v8 = vld [vmem:[%s1026_s3 + $0x10] sm:$0xf] }
  0x41   : > { %432 = vmatpush.bf16.msra.mxu1 %v689_v46  ;;  %445 = vmatpush.bf16.msra.mxu2 %v629_v47  ;;  %v674_v4 = vld [vmem:[%s1026_s3 + $0xa8] sm:$0xf0]  ;;  %v613_v7 = vor.u32 %v726_v1, %v610_v2  ;;  %v725_v9 = vld [vmem:[%s1026_s3 + $0x14] sm:$0xf0]  ;;  %v664_v10 = vld [vmem:[%s1026_s3 + $0x90] sm:$0xf] }
  0x42   : > { %458 = vmatpush.bf16.msra.mxu3 %v693_v51  ;;  %v677_v11 = vor.u32 %v742_v3, %v674_v4  ;;  %v741_v12 = vld [vmem:[%s1026_s3 + $0x94] sm:$0xf0]  ;;  %v724_v13 = vld [vmem:[%s1026_s3 + $0x14] sm:$0xf]  ;;  %v602_v14 = vld [vmem:[%s1026_s3 + $0x18] sm:$0xf0]  ;;  %v601_v17 = vor.u32 %v725_v9, %v600_v8 }
  0x43   : > { %v740_v15 = vld [vmem:[%s1026_s3 + $0x94] sm:$0xf]  ;;  %v666_v16 = vld [vmem:[%s1026_s3 + $0x98] sm:$0xf0]  ;;  %v665_v19 = vor.u32 %v741_v12, %v664_v10  ;;  %v605_v20 = vor.u32 %v724_v13, %v602_v14  ;;  %v592_v21 = vld [vmem:[%s1026_s3] sm:$0xf] }
  0x44   : > { %420 = vmatpush.bf16.msra.mxu0 %v617_v57  ;;  %v216_v18 = vld [vmem:[%s1037_s7] sm:$0xff]  ;;  %v723_v22 = vld [vmem:[%s1026_s3 + $0x4] sm:$0xf0]  ;;  %v656_v23 = vld [vmem:[%s1026_s3 + $0x80] sm:$0xf]  ;;  %v669_v24 = vor.u32 %v740_v15, %v666_v16  ;;  %p718_p3 = scmp.ne.s32.totalorder %s909_s12, 1 }
  0x45   : > { %433 = vmatpush.bf16.msra.mxu1 %v681_v58  ;;  %446 = vmatpush.bf16.msra.mxu2 %v621_v59  ;;  %v739_v25 = vld [vmem:[%s1026_s3 + $0x84] sm:$0xf0]  ;;  %v722_v26 = vld [vmem:[%s1026_s3 + $0x4] sm:$0xf]  ;;  %v594_v27 = vld [vmem:[%s1026_s3 + $0x8] sm:$0xf0]  ;;  %v250_v30 = vunpack.c.l.b16 %v216_v18  ;;  %v593_v31 = vor.u32 %v723_v22, %v592_v21  ;;  %v251_v32 = vunpack.c.h.b16 %v216_v18 }
  0x46   : > { %459 = vmatpush.bf16.msra.mxu3 %v685_v63  ;;  %v738_v28 = vld [vmem:[%s1026_s3 + $0x84] sm:$0xf]  ;;  %v658_v29 = vld [vmem:[%s1026_s3 + $0x88] sm:$0xf0]  ;;  %v657_v33 = vor.u32 %v739_v25, %v656_v23  ;;  %v597_v34 = vor.u32 %v722_v26, %v594_v27  ;;  %v214_v39 = vld [vmem:[#allocation2] sm:$0xff] }
  0x47   : > { %v661_v35 = vor.u32 %v738_v28, %v658_v29  ;;  %v252_v36 = vpack.c.b16 %v250_v30, %v250_v30  ;;  %v253_v37 = vpack.c.b16 %v251_v32, %v251_v32  ;;  %v215_v44 = vld [vmem:[#allocation2 + $0x8] sm:$0xff] }
  0x48   : > { %421 = vmatpush.bf16.msra.mxu0 %v609_v5 }
  0x49   : > { %434 = vmatpush.bf16.msra.mxu1 %v673_v6  ;;  %447 = vmatpush.bf16.msra.mxu2 %v613_v7 }
  0x4a   : > { %460 = vmatpush.bf16.msra.mxu3 %v677_v11 }
  0x4c   : > { %422 = vmatpush.bf16.msra.mxu0 %v601_v17 }
  0x4d   : > { %435 = vmatpush.bf16.msra.mxu1 %v665_v19  ;;  %448 = vmatpush.bf16.msra.mxu2 %v605_v20 }
  0x4e   : > { %461 = vmatpush.bf16.msra.mxu3 %v669_v24 }
  0x50   : > { %423 = vmatpush.bf16.msra.mxu0 %v593_v31 }
  0x51   : > { %436 = vmatpush.bf16.msra.mxu1 %v657_v33  ;;  %449 = vmatpush.bf16.msra.mxu2 %v597_v34 }
  0x52   : > { %462 = vmatpush.bf16.msra.mxu3 %v661_v35 }
  0x53   : > { %424 = vmatmul.bf16.vlgmr.msra.gmra.mxu0 %v252_v36 }
  0x54   : > { %437 = vmatmul.bf16.vlgmr.msra.gmra.mxu1 %v253_v37  ;;  %450 = vmatmul.bf16.vlgmr.msra.gmra.mxu2 %v252_v36 }
  0x55   : > { %463 = vmatmul.bf16.vlgmr.msra.gmra.mxu3 %v253_v37 }
  0xd0   : > { %v425_v38 = vpop.f32.mrf.mxu0 }
  0xd1   : > { %v438_v40 = vpop.f32.mrf.mxu1 }
  0xd2   : > { %v439_v41 = vadd.f32 %v438_v40, %v425_v38 }
  0xd4   : > { %v468_v42 = vadd.f32 %v439_v41, %v214_v39 }
  0xd6   : > { %470 = vst [vmem:[#allocation2] sm:$0xff] %v468_v42 }
  0xd7   : > { %v451_v43 = vpop.f32.mrf.mxu2 }
  0xd8   : > { %v464_v45 = vpop.f32.mrf.mxu3  ;;  %v427_v46 = vpop.f32.mrf.mxu0 }
  0xd9   : > { %v465_v47 = vadd.f32 %v464_v45, %v451_v43  ;;  %v440_v48 = vpop.f32.mrf.mxu1 }
  0xdb   : > { %v469_v49 = vadd.f32 %v465_v47, %v215_v44 }
  0xdc   : > { %475 = sbr.rel (%p718_p3) target bundleno = 230 (0xe6), region = 40 }
  0xdd   : > { %471 = vst [vmem:[#allocation2 + $0x8] sm:$0xff] %v469_v49 }
  0xdf   : > { %v453_v50 = vpop.f32.mrf.mxu2 }
  0xe0   : > { %v466_v51 = vpop.f32.mrf.mxu3 }
  0xe1   : > { %v476_v52 = vld [vmem:[#allocation2] sm:$0xff] }
  0xe2   : > { %478 = vst [vmem:[%s1042_s23] sm:$0xff] %v476_v52 }
  0xe4   : > { %v477_v53 = vld [vmem:[#allocation2 + $0x8] sm:$0xff] }
  0xe5   : > { %479 = vst [vmem:[%s1042_s23 + $0x8] sm:$0xff] %v477_v53 }
  0xe6 PF: > { %s15_s16 = sadd.s32 1, %s925_s16   ;;  %s1142_s9 = smov %s901_s10 }
  0xe7   : > { %p12_p4 = scmp.ge.s32.totalorder %s15_s16, 6   ;;  %s1143_s10 = smov %s905_s11 }
  0xe8   : > { %s1144_s11 = smov %s1013_s29  ;;  %s1145_s12 = smov %s917_s14 }
  0xe9   : > { %s1146_s13 = smov %s921_s15  ;;  %s1147_s14 = smov %s1150_s18 }
  0xea   : > { %s1148_s15 = smov %s1154_s19  ;;  %14 = sbr.rel (!%p12_p4) target bundleno = 5 (0x5), region = 79 }
  0xef   :  { %502 = vsyncpa [#allocation4], 1 }
  0xf0   :  { %504 = vsyncpa [#allocation4 + $0x1], 1 }

</bundles_post_ra>
